<compile_context>
chip_gen: v6e
topology: v6e:2x2x1
jax: 0.10.0
libtpu: 0.0.40
codegen_flags: <defaults>
</compile_context>

<pallas_src>
import functools

import jax
import jax.numpy as jnp
from jax.experimental import pallas as pl
from jax.experimental.pallas import tpu as pltpu


def _building_block_kernel(x_ref, w1_ref, b1_ref, w2_ref, b2_ref,
                           w3_ref, b3_ref, o_ref):
    """One batch tile: three fused matmul+bias+ReLU stages, all in VMEM."""
    mxu_dt = w1_ref.dtype  # bf16: MXU input dtype (accumulate in f32)

    x = x_ref[...]

    # fc1 + relu
    h = jnp.dot(x.astype(mxu_dt), w1_ref[...],
                preferred_element_type=jnp.float32)
    h = jnp.maximum(h + b1_ref[...], 0.0)

    # fc2 + relu
    h = jnp.dot(h.astype(mxu_dt), w2_ref[...],
                preferred_element_type=jnp.float32)
    h = jnp.maximum(h + b2_ref[...], 0.0)

    # fc3 + relu
    h = jnp.dot(h.astype(mxu_dt), w3_ref[...],
                preferred_element_type=jnp.float32)
    h = jnp.maximum(h + b3_ref[...], 0.0)

    # out = relu(h + identity(h)) ; h >= 0 already, so this is exactly 2*h.
    o_ref[...] = (h + h).astype(o_ref.dtype)


def _round_up(a, m):
    return (a + m - 1) // m * m


@functools.partial(jax.jit, static_argnames=("tb",))
def building_block_forward(x, params, *, tb=256):
    """x: (B, dim_in) float32. params: transposed (in,out) weights + biases."""
    w1, b1 = params["w1"], params["b1"]
    w2, b2 = params["w2"], params["b2"]
    w3, b3 = params["w3"], params["b3"]

    B, dim_in = x.shape
    dim_out = w3.shape[1]

    # Batch tile: large for pipelining/MXU occupancy, multiple of 8 (f32
    # sublanes), never bigger than the (padded) batch itself.
    TB = min(tb, _round_up(B, 8))
    Bp = _round_up(B, TB)
    if Bp != B:
        x = jnp.pad(x, ((0, Bp - B), (0, 0)))

    grid = (Bp // TB,)

    # Activation tiles walk the batch axis; weights/biases are pinned to the
    # same block every iteration, so Pallas keeps them VMEM-resident and only
    # DMAs them once.
    x_spec = pl.BlockSpec((TB, dim_in), lambda i: (i, 0))
    out_spec = pl.BlockSpec((TB, dim_out), lambda i: (i, 0))
    resident = lambda arr: pl.BlockSpec(arr.shape, lambda i: (0, 0))

    flops = 2 * Bp * (dim_in * dim_in + dim_in * dim_out + dim_out * dim_out)
    bytes_accessed = (
        x.size * x.dtype.itemsize
        + sum(a.size * a.dtype.itemsize for a in (w1, b1, w2, b2, w3, b3))
        + Bp * dim_out * x.dtype.itemsize
    )

    out = pl.pallas_call(
        _building_block_kernel,
        out_shape=jax.ShapeDtypeStruct((Bp, dim_out), x.dtype),
        grid_spec=pltpu.PrefetchScalarGridSpec(
            num_scalar_prefetch=0,
            grid=grid,
            in_specs=[
                x_spec,
                resident(w1), resident(b1),
                resident(w2), resident(b2),
                resident(w3), resident(b3),
            ],
            out_specs=out_spec,
        ),
        compiler_params=pltpu.CompilerParams(
            dimension_semantics=("parallel",)),
        cost_estimate=pl.CostEstimate(
            flops=flops, transcendentals=0, bytes_accessed=bytes_accessed),
    )(x, w1, b1, w2, b2, w3, b3)

    return out[:B] if Bp != B else out


def init_params(key, dim_in, dim_out,
                weight_dtype=jnp.bfloat16, bias_dtype=jnp.float32):
    """Kaiming-normal (fan_in, gain=sqrt(2)) weights, zero biases — matches
    nn.init.kaiming_normal_(..., nonlinearity='relu') + constant_(bias, 0).
    Weights stored pre-transposed to (in, out) and in bf16 (MXU input dtype);
    biases kept f32 for the f32 VPU bias-add."""
    k1, k2, k3 = jax.random.split(key, 3)

    def kaiming(k, fan_in, shape):
        std = jnp.sqrt(2.0 / fan_in)
        w = jax.random.normal(k, shape, dtype=jnp.float32) * std
        return w.astype(weight_dtype)

    w1 = kaiming(k1, dim_in, (dim_in, dim_in))
    w2 = kaiming(k2, dim_in, (dim_in, dim_out))
    w3 = kaiming(k3, dim_out, (dim_out, dim_out))
    return {
        "w1": w1, "b1": jnp.zeros((1, dim_in), bias_dtype),
        "w2": w2, "b2": jnp.zeros((1, dim_out), bias_dtype),
        "w3": w3, "b3": jnp.zeros((1, dim_out), bias_dtype),
    }


def reference_forward(x, params):
    """Pure-JAX reference mirroring the kernel's numerics (bf16 MXU inputs,
    f32 accumulation / elementwise)."""
    relu = lambda t: jnp.maximum(t, 0.0)
    mxu_dt = params["w1"].dtype
    h = relu(jnp.dot(x.astype(mxu_dt), params["w1"],
                     preferred_element_type=jnp.float32) + params["b1"])
    h = relu(jnp.dot(h.astype(mxu_dt), params["w2"],
                     preferred_element_type=jnp.float32) + params["b2"])
    h = relu(jnp.dot(h.astype(mxu_dt), params["w3"],
                     preferred_element_type=jnp.float32) + params["b3"])
    return h + h  # relu(h + h) with h >= 0


if __name__ == "__main__":
    key = jax.random.PRNGKey(0)

    # --- Small shape matching the module spec (toy: launch-latency bound) ---
    k_x, k_p, key = jax.random.split(key, 3)
    B, dim_in, dim_out = 8, 32, 16
    x = jax.random.normal(k_x, (B, dim_in), dtype=jnp.float32)
    params = init_params(k_p, dim_in, dim_out)

    out = jax.block_until_ready(building_block_forward(x, params))
    ref = reference_forward(x, params)
    assert out.shape == (B, dim_out)
    assert jnp.allclose(out, ref, atol=1e-3, rtol=1e-3), "small-shape mismatch"

    # --- Larger shape exercising the batch grid / pipelining path ---
    k_x2, k_p2 = jax.random.split(key)
    B2, din2, dout2 = 512, 256, 128
    x2 = jax.random.normal(k_x2, (B2, din2), dtype=jnp.float32)
    params2 = init_params(k_p2, din2, dout2)

    out2 = jax.block_until_ready(building_block_forward(x2, params2))
    ref2 = reference_forward(x2, params2)
    assert out2.shape == (B2, dout2)
    assert jnp.allclose(out2, ref2, atol=5e-3, rtol=5e-3), "tiled-shape mismatch"

    print("KERNEL_OK")
</pallas_src>

<mosaic_0001>
module attributes {stable_mosaic.version = 11 : i64} {
  func.func @_building_block_kernel(%arg0: i32, %arg1: memref<8x32xf32, #tpu.memory_space<vmem>>, %arg2: memref<32x32xbf16, #tpu.memory_space<vmem>>, %arg3: memref<1x32xf32, #tpu.memory_space<vmem>>, %arg4: memref<32x16xbf16, #tpu.memory_space<vmem>>, %arg5: memref<1x16xf32, #tpu.memory_space<vmem>>, %arg6: memref<16x16xbf16, #tpu.memory_space<vmem>>, %arg7: memref<1x16xf32, #tpu.memory_space<vmem>>, %arg8: memref<8x16xf32, #tpu.memory_space<vmem>>) attributes {dimension_semantics = [#tpu.dimension_semantics<parallel>], iteration_bounds = array<i64: 1>, scalar_prefetch = 0 : i64, scratch_operands = 0 : i64, tpu.core_type = #tpu.core_type<tc>, window_params = [{transform_indices = @transform_0, window_bounds = array<i64: 8, 32>}, {pipeline_mode = #tpu.pipeline_mode<synchronous>, transform_indices = @transform_1, window_bounds = array<i64: 32, 32>}, {pipeline_mode = #tpu.pipeline_mode<synchronous>, transform_indices = @transform_2, window_bounds = array<i64: 1, 32>}, {pipeline_mode = #tpu.pipeline_mode<synchronous>, transform_indices = @transform_3, window_bounds = array<i64: 32, 16>}, {pipeline_mode = #tpu.pipeline_mode<synchronous>, transform_indices = @transform_4, window_bounds = array<i64: 1, 16>}, {pipeline_mode = #tpu.pipeline_mode<synchronous>, transform_indices = @transform_5, window_bounds = array<i64: 16, 16>}, {pipeline_mode = #tpu.pipeline_mode<synchronous>, transform_indices = @transform_6, window_bounds = array<i64: 1, 16>}, {transform_indices = @transform_7, window_bounds = array<i64: 8, 16>}]} {
    %c0 = arith.constant 0 : index
    %c0_0 = arith.constant 0 : index
    %0 = vector.load %arg1[%c0, %c0_0] : memref<8x32xf32, #tpu.memory_space<vmem>>, vector<8x32xf32>
    %1 = arith.truncf %0 : vector<8x32xf32> to vector<8x32xbf16>
    %c0_1 = arith.constant 0 : index
    %c0_2 = arith.constant 0 : index
    %2 = vector.load %arg2[%c0_1, %c0_2] : memref<32x32xbf16, #tpu.memory_space<vmem>>, vector<32x32xbf16>
    %cst = arith.constant dense<0.000000e+00> : vector<8x32xf32>
    %3 = tpu.matmul %1, %2, %cst {dimension_numbers = #tpu.dot_dimension_numbers<[1], [0], [0], [1], [0, 0, 1, 1], [], []>} : vector<8x32xbf16>, vector<32x32xbf16>, vector<8x32xf32> -> vector<8x32xf32>
    %c0_3 = arith.constant 0 : index
    %c0_4 = arith.constant 0 : index
    %4 = vector.load %arg3[%c0_3, %c0_4] : memref<1x32xf32, #tpu.memory_space<vmem>>, vector<1x32xf32>
    %5 = vector.broadcast %4 : vector<1x32xf32> to vector<8x32xf32>
    %6 = arith.addf %3, %5 : vector<8x32xf32>
    %cst_5 = arith.constant 0.000000e+00 : f32
    %7 = vector.broadcast %cst_5 : f32 to vector<8x32xf32>
    %8 = arith.maximumf %6, %7 : vector<8x32xf32>
    %9 = arith.truncf %8 : vector<8x32xf32> to vector<8x32xbf16>
    %c0_6 = arith.constant 0 : index
    %c0_7 = arith.constant 0 : index
    %10 = vector.load %arg4[%c0_6, %c0_7] : memref<32x16xbf16, #tpu.memory_space<vmem>>, vector<32x16xbf16>
    %cst_8 = arith.constant dense<0.000000e+00> : vector<8x16xf32>
    %11 = tpu.matmul %9, %10, %cst_8 {dimension_numbers = #tpu.dot_dimension_numbers<[1], [0], [0], [1], [0, 0, 1, 1], [], []>} : vector<8x32xbf16>, vector<32x16xbf16>, vector<8x16xf32> -> vector<8x16xf32>
    %c0_9 = arith.constant 0 : index
    %c0_10 = arith.constant 0 : index
    %12 = vector.load %arg5[%c0_9, %c0_10] : memref<1x16xf32, #tpu.memory_space<vmem>>, vector<1x16xf32>
    %13 = vector.broadcast %12 : vector<1x16xf32> to vector<8x16xf32>
    %14 = arith.addf %11, %13 : vector<8x16xf32>
    %cst_11 = arith.constant 0.000000e+00 : f32
    %15 = vector.broadcast %cst_11 : f32 to vector<8x16xf32>
    %16 = arith.maximumf %14, %15 : vector<8x16xf32>
    %17 = arith.truncf %16 : vector<8x16xf32> to vector<8x16xbf16>
    %c0_12 = arith.constant 0 : index
    %c0_13 = arith.constant 0 : index
    %18 = vector.load %arg6[%c0_12, %c0_13] : memref<16x16xbf16, #tpu.memory_space<vmem>>, vector<16x16xbf16>
    %cst_14 = arith.constant dense<0.000000e+00> : vector<8x16xf32>
    %19 = tpu.matmul %17, %18, %cst_14 {dimension_numbers = #tpu.dot_dimension_numbers<[1], [0], [0], [1], [0, 0, 1, 1], [], []>} : vector<8x16xbf16>, vector<16x16xbf16>, vector<8x16xf32> -> vector<8x16xf32>
    %c0_15 = arith.constant 0 : index
    %c0_16 = arith.constant 0 : index
    %20 = vector.load %arg7[%c0_15, %c0_16] : memref<1x16xf32, #tpu.memory_space<vmem>>, vector<1x16xf32>
    %21 = vector.broadcast %20 : vector<1x16xf32> to vector<8x16xf32>
    %22 = arith.addf %19, %21 : vector<8x16xf32>
    %cst_17 = arith.constant 0.000000e+00 : f32
    %23 = vector.broadcast %cst_17 : f32 to vector<8x16xf32>
    %24 = arith.maximumf %22, %23 : vector<8x16xf32>
    %25 = arith.addf %24, %24 : vector<8x16xf32>
    %c0_18 = arith.constant 0 : index
    %c0_19 = arith.constant 0 : index
    %26 = vector.load %arg8[%c0_18, %c0_19] : memref<8x16xf32, #tpu.memory_space<vmem>>, vector<8x16xf32>
    tpu.vector_store %arg8[%c0_18, %c0_19], %25 {strides = array<i32>} : memref<8x16xf32, #tpu.memory_space<vmem>>, vector<8x16xf32>,
    return
  }
  func.func @transform_0(%arg0: i32) -> (i32, i32) {
    %c0_i32 = arith.constant 0 : i32
    %c0_i32_0 = arith.constant 0 : i32
    return %arg0, %c0_i32 : i32, i32
  }
  func.func @transform_1(%arg0: i32) -> (i32, i32) {
    %c0_i32 = arith.constant 0 : i32
    %c0_i32_0 = arith.constant 0 : i32
    %c0_i32_1 = arith.constant 0 : i32
    return %c0_i32, %c0_i32_0 : i32, i32
  }
  func.func @transform_2(%arg0: i32) -> (i32, i32) {
    %c0_i32 = arith.constant 0 : i32
    %c0_i32_0 = arith.constant 0 : i32
    %c0_i32_1 = arith.constant 0 : i32
    return %c0_i32, %c0_i32_0 : i32, i32
  }
  func.func @transform_3(%arg0: i32) -> (i32, i32) {
    %c0_i32 = arith.constant 0 : i32
    %c0_i32_0 = arith.constant 0 : i32
    %c0_i32_1 = arith.constant 0 : i32
    return %c0_i32, %c0_i32_0 : i32, i32
  }
  func.func @transform_4(%arg0: i32) -> (i32, i32) {
    %c0_i32 = arith.constant 0 : i32
    %c0_i32_0 = arith.constant 0 : i32
    %c0_i32_1 = arith.constant 0 : i32
    return %c0_i32, %c0_i32_0 : i32, i32
  }
  func.func @transform_5(%arg0: i32) -> (i32, i32) {
    %c0_i32 = arith.constant 0 : i32
    %c0_i32_0 = arith.constant 0 : i32
    %c0_i32_1 = arith.constant 0 : i32
    return %c0_i32, %c0_i32_0 : i32, i32
  }
  func.func @transform_6(%arg0: i32) -> (i32, i32) {
    %c0_i32 = arith.constant 0 : i32
    %c0_i32_0 = arith.constant 0 : i32
    %c0_i32_1 = arith.constant 0 : i32
    return %c0_i32, %c0_i32_0 : i32, i32
  }
  func.func @transform_7(%arg0: i32) -> (i32, i32) {
    %c0_i32 = arith.constant 0 : i32
    %c0_i32_0 = arith.constant 0 : i32
    return %arg0, %c0_i32 : i32, i32
  }
}

</mosaic_0001>

<bundles_post_ra>
// kernel: building_block_forward.1
= control target key start
LH: loop header
LB: loop body
LE: loop exit
PB: predicated region body
PF: predicated region fallthrough
CT: control target
= control target key end

     0   :  { %12 = vsyncpa [#allocation3], 0  ;;  %s502_s0 = inlined_call_operand.vmem [shape: f32[8,32], index: 0, kind: input, shape index: {}]   ;;  %s503_s1 = inlined_call_operand.vmem [shape: bf16[32,32], index: 1, kind: input, shape index: {}]   ;;  %s504_s2 = inlined_call_operand.vmem [shape: f32[1,32], index: 2, kind: input, shape index: {}]   ;;  %s505_s3 = inlined_call_operand.vmem [shape: bf16[32,16], index: 3, kind: input, shape index: {}]   ;;  %s506_s4 = inlined_call_operand.hbm [shape: f32[1,16], index: 4, kind: input, shape index: {}]   ;;  %s507_s5 = inlined_call_operand.hbm [shape: bf16[16,16], index: 5, kind: input, shape index: {}]   ;;  %s508_s6 = inlined_call_operand.hbm [shape: f32[1,16], index: 6, kind: input, shape index: {}]   ;;  %s509_s7 = inlined_call_operand.hbm [shape: f32[8,16], index: 7, kind: output, shape index: {}]  }
   0x1   :  { %13 = vsyncpa [#allocation6], 0 }
   0x2   :  { %14 = vsyncpa [#allocation4], 0  ;;  %s422_s24 = smov [#allocation5]  }
   0x3   :  { %s38_s25 = sshll.u32 %s422_s24, 4  ;;  %s39_s25 = int_to_ptr.vmem [resolvable:$true] %s38_s25 }
   0x4   :  { %s344_s26 = scalar_lea.vmem %s39_s25, 128  ;;  %p349_p1 = scmp.lt.s32.totalorder %s39_s25, %s39_s25 }
   0x5   :  { %p345_p0 = scmp.ne.s32.totalorder %s39_s25, %s344_s26  ;;  %p350_p2 = scmp.lt.s32.totalorder %s344_s26, %s344_s26 }
   0x7   :  { %p351_p3 = por %p350_p2, %p349_p1 }
   0x9   :  { %p352_p4 = pnand %p351_p3, %p345_p0 }
   0xb   :  { %355 = shalt.err (!%p352_p4)
}
   0xc   :  { %s423_s27 = smov 64   ;;  %s424_s28 = smov 4  }
   0xd   :  { %44 = dma.hbm_to_vmem [thread:$0]  %s507_s5, 128, %s39_s25, [#allocation6], %s423_s27, %s423_s27, %s424_s28  }
   0xe   :  { %s425_s8 = smov [#allocation2]   ;;  %s426_s10 = smov [#allocation7]  }
   0xf   :  { %s29_s9 = sshll.u32 %s425_s8, 4  ;;  %s51_s11 = sshll.u32 %s426_s10, 4  ;;  %s30_s9 = int_to_ptr.vmem [resolvable:$true] %s29_s9  ;;  %s52_s11 = int_to_ptr.vmem [resolvable:$true] %s51_s11 }
  0x10   :  { %s364_s12 = scalar_lea.vmem %s30_s9, 16  ;;  %s368_s13 = scalar_lea.vmem %s30_s9, 32 }
  0x11   :  { %p365_p5 = scmp.ne.s32.totalorder %s30_s9, %s364_s12  ;;  %p369_p6 = scmp.lt.s32.totalorder %s30_s9, %s30_s9 }
  0x12   :  { %p370_p7 = scmp.lt.s32.totalorder %s368_s13, %s364_s12 }
  0x14   :  { %p371_p8 = por %p370_p7, %p369_p6 }
  0x16   :  { %p372_p9 = pnand %p371_p8, %p365_p5 }
  0x18   :  { %375 = shalt.err (!%p372_p9)
}
  0x19   :  { %32 = dma.hbm_to_vmem [thread:$0]  %s506_s4, 16, %s30_s9, [#allocation3]  }
  0x1a   :  { %s384_s16 = scalar_lea.vmem %s52_s11, 16  ;;  %s388_s5 = scalar_lea.vmem %s52_s11, 32 }
  0x1b   :  { %p385_p10 = scmp.ne.s32.totalorder %s52_s11, %s384_s16  ;;  %p389_p11 = scmp.lt.s32.totalorder %s52_s11, %s52_s11 }
  0x1c   :  { %p390_p12 = scmp.lt.s32.totalorder %s388_s5, %s384_s16 }
  0x1e   :  { %p391_p13 = por %p390_p12, %p389_p11 }
  0x20   :  { %p392_p0 = pnand %p391_p13, %p385_p10 }
  0x22   :  { %395 = shalt.err (!%p392_p0)
}
  0x23   :  { %54 = dma.hbm_to_vmem [thread:$0]  %s508_s6, 16, %s52_s11, [#allocation6]  }
  0x24   :  { %416 = dma.done.wait [#allocation3], 16  }
  0x25   :  { %417 = vsyncadd [#allocation3], 4294967280 }
  0x26   :  { %418 = dma.done.wait [#allocation6], 144  }
  0x27   :  { %419 = vsyncadd [#allocation6], 4294967152  ;;  %v427_v0 = vmov 0.0   ;;  %vm428_vm0 = vmmov 0   ;;  %v331_v1 = vld [vmem:[%s503_s1 + $0x8] sm:$0xff]   ;;  %v332_v2 = vld [vmem:[%s503_s1] sm:$0xff]  }
  0x28   :  { %301 = vmatprep.subr.bf16.mxu0 %v427_v0  ;;  %305 = vmatprep.mubr.msk.bf16.mxu0 %vm428_vm0, %v427_v0  ;;  %v65_v3 = vld [vmem:[%s502_s0] sm:$0xff]  ;;  %vm90_vm1 = vcmask 261120   ;;  %v333_v5 = vld [vmem:[%s505_s3 + $0x8] sm:$0xff]   ;;  %vm219_vm2 = vcmask 130048  }
  0x29   :  { %309 = vmatprep.subr.bf16.mxu1 %v427_v0  ;;  %313 = vmatprep.mubr.msk.bf16.mxu1 %vm428_vm0, %v427_v0  ;;  %v66_v4 = vpack.c.bf16 %v65_v3, %v65_v3  ;;  %v334_v6 = vld [vmem:[%s505_s3] sm:$0xff]   ;;  %v290_v24 = vld [vmem:[#allocation7] ss:$0 sm:$0xff] }
  0x2a   :  { %302 = vmatpush3.bf16.msra.mxu0 %v331_v1  ;;  %310 = vmatpush3.bf16.msra.mxu1 %v333_v5  ;;  %v335_v7 = vld [vmem:[#allocation5] sm:$0xff]   ;;  %v282_v8 = vld [vmem:[%s504_s2] ss:$0 sm:$0xff]  ;;  %s429_s2 = smov [#allocation8]  }
  0x2b   :  { %303 = vmatprep.subr.bf16.mxu0 %v427_v0  ;;  %311 = vmatprep.subr.bf16.mxu1 %v427_v0  ;;  %v286_v16 = vld [vmem:[#allocation2] ss:$0 sm:$0xff]  ;;  %s272_s3 = sshll.u32 %s429_s2, 4  ;;  %s273_s3 = int_to_ptr.vmem [resolvable:$true] %s272_s3 }
  0x2c   :  { %s396_s27 = scalar_lea.vmem %s273_s3, 128  ;;  %p401_p2 = scmp.lt.s32.totalorder %s273_s3, %s273_s3 }
  0x2d   :  { %p397_p1 = scmp.ne.s32.totalorder %s273_s3, %s396_s27  ;;  %p402_p3 = scmp.lt.s32.totalorder %s396_s27, %s396_s27 }
  0x2e   :  { %304 = vmatpush3.bf16.msra.mxu0 %v332_v2  ;;  %312 = vmatpush3.bf16.msra.mxu1 %v334_v6 }
  0x2f   :  { %317 = vmatprep.subr.bf16.mxu0 %v427_v0  ;;  %p403_p4 = por %p402_p3, %p401_p2 }
  0x31   :  { %306 = vmatmul.mubr.msk.bf16.vlgmr.msra.gmra.mxu0 %vm90_vm1, %v66_v4  ;;  %p404_p5 = pnand %p403_p4, %p397_p1 }
  0x32   :  { %319 = vmatprep.mubr.msk.bf16.mxu0 %vm428_vm0, %v427_v0  ;;  %318 = vmatpush3.bf16.msra.mxu0 %v335_v7 }
  0xf1   :  { %v128_v9 = vpop.f32.mrf.mxu0 }
  0xf2   :  { %v129_v10 = vadd.f32 %v282_v8, %v128_v9 }
  0xf3   :  { %v307_v11 = vpop.f32.mrf.mxu0 }
  0xf4   :  { %v134_v12 = vmax.f32 %v129_v10, 0.0 }
  0xf5   :  { %v131_v13 = vpop.f32.mrf.mxu0 }
  0xf6   :  { %v135_v14 = vpack.c.bf16 %v134_v12, %v134_v12 }
  0xf7   :  { %v308_v15 = vpop.f32.mrf.mxu0 }
  0xf8   :  { %314 = vmatmul.mubr.msk.bf16.vlgmr.msra.gmra.mxu1 %vm90_vm1, %v135_v14 }
 0x1b8   :  { %v196_v17 = vpop.f32.mrf.mxu1 }
 0x1b9   :  { %v197_v18 = vadd.f32 %v286_v16, %v196_v17 }
 0x1ba   :  { %v315_v19 = vpop.f32.mrf.mxu1 }
 0x1bb   :  { %v202_v20 = vmax.f32 %v197_v18, 0.0 }
 0x1bc   :  { %v199_v21 = vpop.f32.mrf.mxu1 }
 0x1bd   :  { %v203_v22 = vpack.c.bf16 %v202_v20, %v202_v20 }
 0x1be   :  { %v316_v23 = vpop.f32.mrf.mxu1 }
 0x1bf   :  { %320 = vmatmul.mubr.msk.bf16.vlgmr.msra.gmra.mxu0 %vm219_vm2, %v203_v22 }
 0x27f   :  { %v257_v25 = vpop.f32.mrf.mxu0 }
 0x280   :  { %v258_v26 = vadd.f32 %v290_v24, %v257_v25 }
 0x281   :  { %v321_v27 = vpop.f32.mrf.mxu0 }
 0x282   :  { %v263_v28 = vmax.f32 %v258_v26, 0.0 }
 0x283   :  { %v260_v29 = vpop.f32.mrf.mxu0 }
 0x284   :  { %v264_v30 = vadd.f32 %v263_v28, %v263_v28 }
 0x285   :  { %v322_v31 = vpop.f32.mrf.mxu0 }
 0x286   :  { %265 = vst.msk [vmem:[#allocation8] sm:$0xff] %vm219_vm2, %v264_v30 }
 0x287   :  { %407 = shalt.err (!%p404_p5)
}
 0x288   :  { %275 = dma.vmem_to_hbm [thread:$0]  %s273_s3, 128, %s509_s7, [#allocation4]  }
 0x289   :  { %420 = dma.done.wait [#allocation4], 128  }
 0x28a   :  { %421 = vsyncadd [#allocation4], 4294967168 }
 0x28b   :  { %279 = vsyncpa [#allocation3], 1 }
 0x28c   :  { %280 = vsyncpa [#allocation6], 1 }
 0x28d   :  { %281 = vsyncpa [#allocation4], 1 }

</bundles_post_ra>
